<compile_context>
chip_gen: v5e
topology: v5e:2x2
jax: 0.10.0
libtpu: 0.0.40
codegen_flags: <defaults>
</compile_context>

<pallas_src>
import jax
import jax.numpy as jnp
from jax import lax
from jax.experimental import pallas as pl
from jax.experimental.pallas import tpu as pltpu


# -----------------------------------------------------------------------------
# Kernel: per-(k, b, candidate-tile) projection + dot-product similarity mean
# -----------------------------------------------------------------------------
def prediction_kernel(c_ref, w_ref, cand_ref, out_ref):
    """c_ref: (S, A); w_ref: (A, E); cand_ref: (TN, S, E); out_ref: (TN, S)."""
    E = cand_ref.shape[-1]
    # MXU: locC = c_b @ W_k^T  -> (S, E)
    loc = jnp.dot(c_ref[...], w_ref[...], preferred_element_type=jnp.float32)
    # VPU + XLU: mean over the encoder dim of locC * candidates -> (TN, S)
    sim = jnp.sum(cand_ref[...] * loc[None, :, :], axis=-1) * (1.0 / E)
    out_ref[...] = sim.astype(out_ref.dtype)


# -----------------------------------------------------------------------------
# Host-side wrapper
# -----------------------------------------------------------------------------
def prediction_network_forward(weights_t, c, candidates, *, candidate_tile=None):
    """weights_t: (K, A, E) stacked W_k^T; c: (B, S, A) f32;
    candidates: (K, B, N, S, E) f32.  Returns a list of K arrays (B, N, S)."""
    K, A, E = weights_t.shape
    B, S, _ = c.shape
    N = candidates.shape[2]

    # Candidate tile along N: full N for small candidate counts, otherwise a
    # sublane-aligned 128-row tile so VMEM stays bounded on 64 MiB parts (v7x).
    if candidate_tile is None:
        tn = N if N <= 256 else 128
    else:
        tn = candidate_tile
    n_tiles = pl.cdiv(N, tn)

    # Scoped-VMEM budget: double-buffered blocks of every operand, with headroom.
    blk_bytes = 4 * 2 * (S * A + A * E + tn * S * E + tn * S)
    vmem_limit = int(min(64 * 1024 * 1024, max(32 * 1024 * 1024, 4 * blk_bytes)))

    flops = 2 * K * B * (S * A * E + N * S * E)
    bytes_accessed = 4 * (B * S * A + K * A * E + K * B * N * S * E + K * B * N * S)

    out = pl.pallas_call(
        prediction_kernel,
        out_shape=jax.ShapeDtypeStruct((K, B, N, S), jnp.float32),
        grid_spec=pltpu.PrefetchScalarGridSpec(
            num_scalar_prefetch=0,
            grid=(K, B, n_tiles),
            in_specs=[
                pl.BlockSpec((None, S, A), lambda k, b, n: (b, 0, 0)),           # c
                pl.BlockSpec((None, A, E), lambda k, b, n: (k, 0, 0)),           # W_k^T
                pl.BlockSpec((None, None, tn, S, E),
                             lambda k, b, n: (k, b, n, 0, 0)),                   # candidates
            ],
            out_specs=pl.BlockSpec((None, None, tn, S),
                                   lambda k, b, n: (k, b, n, 0)),
        ),
        compiler_params=pltpu.CompilerParams(
            dimension_semantics=("parallel", "parallel", "parallel"),
            vmem_limit_bytes=vmem_limit),
        cost_estimate=pl.CostEstimate(
            flops=flops, transcendentals=0, bytes_accessed=bytes_accessed),
    )(c, weights_t, candidates)

    return [out[k] for k in range(K)]


# -----------------------------------------------------------------------------
# Parameter init (mirrors the PyTorch module's default-path initialization)
# -----------------------------------------------------------------------------
def init_predictor_weights(key, n_predicts, dim_ar, dim_enc, residual_std=0.01):
    keys = jax.random.split(key, n_predicts)
    bound = 1.0 / float(dim_ar) ** 0.5
    ws = []
    for k in range(n_predicts):
        if dim_enc > dim_ar:
            k1, k2 = jax.random.split(keys[k])
            top = jax.random.normal(k1, (dim_ar, dim_ar), jnp.float32)
            bot = residual_std * jax.random.normal(
                k2, (dim_enc - dim_ar, dim_ar), jnp.float32)
            w = jnp.concatenate([top, bot], axis=0)              # (E, A)
        else:
            w = jax.random.uniform(keys[k], (dim_enc, dim_ar), jnp.float32,
                                   -bound, bound)                # (E, A)
        ws.append(w.T)                                           # store (A, E)
    return jnp.stack(ws, axis=0)                                 # (K, A, E)


# -----------------------------------------------------------------------------
# Pure-JAX reference (matches PyTorch semantics)
# -----------------------------------------------------------------------------
def reference_forward(weights_t, c, candidates):
    K = weights_t.shape[0]
    outs = []
    for k in range(K):
        loc = jnp.dot(c, weights_t[k], precision=lax.Precision.HIGHEST)  # (B,S,E)
        loc = loc[:, None, :, :]                                         # (B,1,S,E)
        outs.append(jnp.mean(loc * candidates[k], axis=3))               # (B,N,S)
    return outs


if __name__ == "__main__":
    n_predicts, dim_ar, dim_enc = 4, 32, 32
    B, S, n_cand = 2, 8, 4

    key = jax.random.PRNGKey(0)
    k_w, k_c, k_cand = jax.random.split(key, 3)

    weights_t = init_predictor_weights(k_w, n_predicts, dim_ar, dim_enc)
    c = jax.random.normal(k_c, (B, S, dim_ar), jnp.float32)
    candidates = jax.random.normal(
        k_cand, (n_predicts, B, n_cand, S, dim_enc), jnp.float32)

    outs = jax.block_until_ready(
        prediction_network_forward(weights_t, c, candidates))

    refs = reference_forward(weights_t, c, candidates)
    assert len(outs) == n_predicts
    for o, r in zip(outs, refs):
        assert o.shape == (B, n_cand, S), o.shape
        assert jnp.allclose(o, r, rtol=1e-3, atol=1e-3), (o, r)
    print("KERNEL_OK")
</pallas_src>

<mosaic_0001>
module attributes {stable_mosaic.version = 11 : i64} {
  func.func @prediction_kernel(%arg0: i32, %arg1: i32, %arg2: i32, %arg3: memref<1x8x32xf32, #tpu.memory_space<vmem>>, %arg4: memref<1x32x32xf32, #tpu.memory_space<vmem>>, %arg5: memref<1x1x4x8x32xf32, #tpu.memory_space<vmem>>, %arg6: memref<1x1x4x8xf32, #tpu.memory_space<vmem>>) attributes {dimension_semantics = [#tpu.dimension_semantics<parallel>, #tpu.dimension_semantics<parallel>, #tpu.dimension_semantics<parallel>], iteration_bounds = array<i64: 4, 2, 1>, scalar_prefetch = 0 : i64, scratch_operands = 0 : i64, tpu.core_type = #tpu.core_type<tc>, window_params = [{transform_indices = @transform_0, window_bounds = array<i64: 1, 8, 32>}, {transform_indices = @transform_1, window_bounds = array<i64: 1, 32, 32>}, {transform_indices = @transform_2, window_bounds = array<i64: 1, 1, 4, 8, 32>}, {transform_indices = @transform_3, window_bounds = array<i64: 1, 1, 4, 8>}]} {
    %c0 = arith.constant 0 : index
    %c0_0 = arith.constant 0 : index
    %c0_1 = arith.constant 0 : index
    %0 = vector.load %arg3[%c0, %c0_0, %c0_1] : memref<1x8x32xf32, #tpu.memory_space<vmem>>, vector<1x8x32xf32>
    %1 = vector.shape_cast %0 : vector<1x8x32xf32> to vector<8x32xf32>
    %c0_2 = arith.constant 0 : index
    %c0_3 = arith.constant 0 : index
    %c0_4 = arith.constant 0 : index
    %2 = vector.load %arg4[%c0_2, %c0_3, %c0_4] : memref<1x32x32xf32, #tpu.memory_space<vmem>>, vector<1x32x32xf32>
    %3 = vector.shape_cast %2 : vector<1x32x32xf32> to vector<32x32xf32>
    %cst = arith.constant dense<0.000000e+00> : vector<8x32xf32>
    %4 = tpu.matmul %1, %3, %cst {dimension_numbers = #tpu.dot_dimension_numbers<[1], [0], [0], [1], [0, 0, 1, 1], [], []>} : vector<8x32xf32>, vector<32x32xf32>, vector<8x32xf32> -> vector<8x32xf32>
    %c0_5 = arith.constant 0 : index
    %c0_6 = arith.constant 0 : index
    %c0_7 = arith.constant 0 : index
    %c0_8 = arith.constant 0 : index
    %c0_9 = arith.constant 0 : index
    %5 = vector.load %arg5[%c0_5, %c0_6, %c0_7, %c0_8, %c0_9] : memref<1x1x4x8x32xf32, #tpu.memory_space<vmem>>, vector<1x1x4x8x32xf32>
    %6 = vector.shape_cast %5 : vector<1x1x4x8x32xf32> to vector<4x8x32xf32>
    %7 = vector.shape_cast %4 : vector<8x32xf32> to vector<1x8x32xf32>
    %8 = vector.broadcast %7 : vector<1x8x32xf32> to vector<4x8x32xf32>
    %9 = arith.mulf %6, %8 : vector<4x8x32xf32>
    %cst_10 = arith.constant dense<0.000000e+00> : vector<4x8xf32>
    %10 = vector.multi_reduction <add>, %9, %cst_10 [2] : vector<4x8x32xf32> to vector<4x8xf32>
    %cst_11 = arith.constant 3.125000e-02 : f32
    %11 = vector.broadcast %cst_11 : f32 to vector<4x8xf32>
    %12 = arith.mulf %10, %11 : vector<4x8xf32>
    %c0_12 = arith.constant 0 : index
    %c0_13 = arith.constant 0 : index
    %c0_14 = arith.constant 0 : index
    %c0_15 = arith.constant 0 : index
    %13 = vector.load %arg6[%c0_12, %c0_13, %c0_14, %c0_15] : memref<1x1x4x8xf32, #tpu.memory_space<vmem>>, vector<1x1x4x8xf32>
    %14 = vector.shape_cast %13 : vector<1x1x4x8xf32> to vector<4x8xf32>
    %15 = vector.shape_cast %12 : vector<4x8xf32> to vector<1x1x4x8xf32>
    tpu.vector_store %arg6[%c0_12, %c0_13, %c0_14, %c0_15], %15 {strides = array<i32>} : memref<1x1x4x8xf32, #tpu.memory_space<vmem>>, vector<1x1x4x8xf32>,
    return
  }
  func.func @transform_0(%arg0: i32, %arg1: i32, %arg2: i32) -> (i32, i32, i32) {
    %c0_i32 = arith.constant 0 : i32
    %c0_i32_0 = arith.constant 0 : i32
    %c0_i32_1 = arith.constant 0 : i32
    return %arg1, %c0_i32, %c0_i32_0 : i32, i32, i32
  }
  func.func @transform_1(%arg0: i32, %arg1: i32, %arg2: i32) -> (i32, i32, i32) {
    %c0_i32 = arith.constant 0 : i32
    %c0_i32_0 = arith.constant 0 : i32
    %c0_i32_1 = arith.constant 0 : i32
    return %arg0, %c0_i32, %c0_i32_0 : i32, i32, i32
  }
  func.func @transform_2(%arg0: i32, %arg1: i32, %arg2: i32) -> (i32, i32, i32, i32, i32) {
    %c0_i32 = arith.constant 0 : i32
    %c0_i32_0 = arith.constant 0 : i32
    %c0_i32_1 = arith.constant 0 : i32
    return %arg0, %arg1, %arg2, %c0_i32, %c0_i32_0 : i32, i32, i32, i32, i32
  }
  func.func @transform_3(%arg0: i32, %arg1: i32, %arg2: i32) -> (i32, i32, i32, i32) {
    %c0_i32 = arith.constant 0 : i32
    %c0_i32_0 = arith.constant 0 : i32
    return %arg0, %arg1, %arg2, %c0_i32 : i32, i32, i32, i32
  }
}

</mosaic_0001>

<bundles_post_ra>
// kernel: tpu_custom_call.1
= control target key start
LH: loop header
LB: loop body
LE: loop exit
PB: predicated region body
PF: predicated region fallthrough
CT: control target
= control target key end

     0   :  { %s1262_s0 = inlined_call_operand.hbm [shape: f32[2,8,32], index: 0, kind: input, shape index: {}]   ;;  %s1263_s1 = inlined_call_operand.hbm [shape: f32[4,32,32], index: 1, kind: input, shape index: {}]   ;;  %s1264_s2 = inlined_call_operand.hbm [shape: f32[4,2,4,8,32], index: 2, kind: input, shape index: {}]   ;;  %s1265_s3 = inlined_call_operand.hbm [shape: f32[4,2,4,8], index: 3, kind: output, shape index: {}]  }
   0x1   :  { %1276 = sst [smem:[#allocation23_spill]] %s1262_s0 }
   0x2   :  { %1277 = sst [smem:[#allocation24_spill]] %s1263_s1 }
   0x3   :  { %1278 = sst [smem:[#allocation25_spill]] %s1265_s3 }
   0x4   :  { %8 = vsyncpa [#allocation3], 0 }
   0x5   :  { %10 = vsyncpa [#allocation3 + $0x1], 0 }
   0x6   :  { %11 = vsyncpa [#allocation6], 0 }
   0x7   :  { %13 = vsyncpa [#allocation6 + $0x1], 0 }
   0x8   :  { %14 = vsyncpa [#allocation4], 0 }
   0x9   :  { %16 = vsyncpa [#allocation4 + $0x1], 0  ;;  %s958_s12 = smov 0   ;;  %s960_s13 = smov 0  }
   0xa   :  { %s962_s14 = smov 0   ;;  %s964_s15 = smov 0  }
   0xb   :  { %s966_s16 = smov 0   ;;  %s968_s17 = smov 0  }
   0xc   :  { %s970_s18 = smov 0   ;;  %s972_s19 = smov 0  }
   0xd   :  { %s974_s20 = smov 0   ;;  %s976_s21 = smov 0  }
   0xe   :  { %s978_s22 = smov 0   ;;  %s980_s23 = smov 0  }
   0xf   :  { %s982_s24 = smov 0   ;;  %s984_s25 = smov 0  }
  0x10 LB: > { %1279 = sst [smem:[#allocation13_spill]] %s882_s12  ;;  %p56_p0 = scmp.eq.s32.totalorder %s934_s25, 0  ;;  %s934_s25 = sphi %s984_s25, %s22_s25   ;;  %s930_s24 = sphi %s982_s24, %s1321_s24   ;;  %s926_s23 = sphi %s980_s23, %s1312_s23   ;;  %s922_s22 = sphi %s978_s22, %s1320_s22   ;;  %s918_s21 = sphi %s976_s21, %s1311_s21   ;;  %s914_s20 = sphi %s974_s20, %s1310_s20   ;;  %s910_s19 = sphi %s972_s19, %s1319_s19   ;;  %s906_s18 = sphi %s970_s18, %s1318_s18   ;;  %s902_s17 = sphi %s968_s17, %s1308_s17   ;;  %s898_s16 = sphi %s966_s16, %s1317_s16   ;;  %s894_s15 = sphi %s964_s15, %s1316_s15   ;;  %s890_s14 = sphi %s962_s14, %s1306_s14   ;;  %s886_s13 = sphi %s960_s13, %s1315_s13   ;;  %s882_s12 = sphi %s958_s12, %s1314_s12  }
  0x11   : > { %1280 = sst [smem:[#allocation14_spill]] %s890_s14  ;;  %s74_s26 = sadd.s32 1, %s902_s17 }
  0x12   : > { %1281 = sst [smem:[#allocation15_spill]] %s902_s17  ;;  %p81_p1 = scmp.ne.s32.totalorder %s902_s17, %s898_s16 }
  0x13   : > { %1282 = sst [smem:[#allocation16_spill]] %s914_s20  ;;  %p87_p2 = scmp.ne.s32.totalorder %s898_s16, %s894_s15 }
  0x14   : > { %1283 = sst [smem:[#allocation17_spill]] %s926_s23  ;;  %p574_p3 = scmp.lt.s32.totalorder %s934_s25, 8 }
  0x15   : > { %p83_p4 = por %p81_p1, %p56_p0  ;;  %s190_s27 = sand.u32 1, %s934_s25  }
  0x16   : > { %s192_s28 = sand.u32 1, %s902_s17   ;;  %s551_s30 = sshll.u32 %s930_s24, 5 }
  0x17   : > { %s533_s29 = sshll.u32 %s192_s28, 5  ;;  %s1284_s1 = sld [smem:[#allocation24_spill]] }
  0x18   : > { %s194_s8 = scalar_lea.vmem [#allocation5], %s533_s29  ;;  %p564_p5 = pnand %p574_p3, %p83_p4 }
  0x19   : > { %s202_s9 = sshll.u32 %s194_s8, 4  ;;  %p540_p6 = scmp.ge.s32.totalorder %s934_s25, 1  ;;  %s203_s9 = int_to_ptr.vmem [resolvable:$true] %s202_s9 }
  0x1a   : > { %p236_p7 = scmp.lt.s32.totalorder %s934_s25, 9  ;;  %s1047_s10 = scalar_lea.sflag [#allocation6], %s190_s27 }
  0x1b   : > { %s1266_s11 = smov 128   ;;  %s1267_s28 = smov 8  }
  0x1c   : > { %p1053_p8 = pnand %p540_p6, %p236_p7  ;;  %s37_s4 = sadd.s32 1, %s926_s23 }
  0x1d   : > { %s199_s6 = scalar_lea.hbm %s1284_s1, %s551_s30  ;;  %s1058_s30 = sadd.s32 4294967295, %s934_s25  }
  0x1e   : > { %s200_s7 = sshll.u32 %s199_s6, 4  ;;  %s41_s27 = sadd.s32 1, %s930_s24  ;;  %s201_s7 = int_to_ptr.hbm [resolvable:$true] %s200_s7 }
  0x1f   : > { %566 = dma.hbm_to_vmem [thread:$0]  (!%p564_p5), %s201_s7, 512, %s203_s9, %s1047_s10, %s1266_s11, %s1266_s11, %s1267_s28  }
  0x20   : > { %p39_p9 = scmp.ge.s32.totalorder %s37_s4, 2  ;;  %s48_s5 = sadd.s32 1, %s914_s20 }
  0x21   : > { %p55_p10 = scmp.ne.s32.totalorder %s914_s20, %s910_s19  ;;  %p61_p11 = scmp.ne.s32.totalorder %s910_s19, %s906_s18 }
  0x22   : > { %s1323_s4 = smov (%p39_p9, %s37_s4), 0  ;;  %s1325_s27 = smov (!%p39_p9, %s41_s27), %s930_s24 }
  0x23   : > { %1286 = sst [smem:[#allocation18_spill]] %s1323_s4  ;;  %s45_s6 = ssub.s32 %s926_s23, %s1323_s4 }
  0x24   : > { %p1074_p12 = por %p56_p0, %p55_p10  ;;  %p43_p13 = scmp.ge.s32.totalorder %s1325_s27, 4 }
  0x25   : > { %p46_p1 = scmp.eq.s32.totalorder %s45_s6, 0  ;;  %p62_p4 = scmp.eq.s32.totalorder %s1058_s30, 0 }
  0x26   : > { %p145_p5 = scmp.eq.s32.totalorder %s1058_s30, 7  ;;  %s1327_s27 = smov (%p43_p13, %s1325_s27), 0 }
  0x27   : > { %1288 = sst [smem:[#allocation19_spill]] %s1327_s27  ;;  %p1087_p6 = por %p62_p4, %p61_p11 }
  0x28   : > { %s1083_s18 = scalar_select %p46_p1, %s914_s20, %s48_s5  }
  0x29   : > { %s71_s9 = ssub.s32 %s930_s24, %s1327_s27  ;;  %p1098_p9 = por %p87_p2, %p62_p4 }
  0x2a   : > { %1289 = sst [smem:[#allocation20_spill]] %s1083_s18  ;;  %p72_p7 = scmp.eq.s32.totalorder %s71_s9, 0 }
  0x2b   : > { %s99_s28 = sor.u32 %s71_s9, %s45_s6  ;;  %s171_s5 = sand.u32 1, %s914_s20  }
  0x2c   : > { %s1106_s1 = scalar_select %p72_p7, %s902_s17, %s74_s26  }
  0x2d   : > { %p1108_p10 = scmp.eq.s32.totalorder %s99_s28, 0  ;;  %s531_s15 = sshll.u32 %s171_s5, 3 }
  0x2e   : > { %1292 = sst [smem:[#allocation21_spill]] %s1106_s1  ;;  %s532_s27 = sshll.u32 %s926_s23, 3 }
  0x2f   : > { %s1294_s0 = sld [smem:[#allocation23_spill]]  ;;  %s175_s9 = scalar_lea.vmem [#allocation2], %s531_s15 }
  0x30   : > { %s183_s20 = sshll.u32 %s175_s9, 4  ;;  %p561_p2 = pnand %p574_p3, %p1074_p12  ;;  %s184_s20 = int_to_ptr.vmem [resolvable:$true] %s183_s20 }
  0x31   : > { %s537_s28 = sshll.u32 %s926_s23, 2  ;;  %s172_s1 = scalar_lea.sflag [#allocation3], %s171_s5 }
  0x32   : > { %s528_s17 = sadd.s32 4294967294, %s934_s25   ;;  %s104_s3 = sadd.s32 1, %s890_s14 }
  0x33   : > { %p111_p11 = scmp.ne.s32.totalorder %s890_s14, %s886_s13  ;;  %p117_p1 = scmp.ne.s32.totalorder %s886_s13, %s882_s12 }
  0x34   : > { %p151_p7 = scmp.eq.s32.totalorder %s528_s17, 7  ;;  %s538_s15 = sshll.u32 %s930_s24, 3 }
  0x35   : > { %s179_s6 = scalar_lea.hbm %s1294_s0, %s532_s27  ;;  %p1132_p13 = por %p111_p11, %p56_p0 }
  0x36   : > { %s181_s26 = sshll.u32 %s179_s6, 4  ;;  %p1140_p12 = por %p145_p5, %p111_p11  ;;  %s182_s26 = int_to_ptr.hbm [resolvable:$true] %s181_s26 }
  0x37   : > { %563 = dma.hbm_to_vmem [thread:$0]  (!%p561_p2), %s182_s26, 128, %s184_s20, %s172_s1  }
  0x38   : > { %s1128_s27 = scalar_select %p1108_p10, %s890_s14, %s104_s3  }
  0x39   : > { %p1146_p2 = por %p117_p1, %p62_p4  ;;  %s214_s20 = sand.u32 1, %s890_s14  }
  0x3a   : > { %1295 = sst [smem:[#allocation22_spill]] %s1128_s27  ;;  %p1151_p10 = por %p151_p7, %p117_p1 }
  0x3b   : > { %s536_s5 = sshll.u32 %s214_s20, 5  ;;  %s223_s6 = sadd.s32 %s538_s15, %s537_s28 }
  0x3c   : > { %s216_s26 = scalar_lea.vmem [#allocation7], %s536_s5  ;;  %s539_s3 = sshll.u32 %s223_s6, 3 }
  0x3d   : > { %s228_s9 = sshll.u32 %s216_s26, 4  ;;  %s225_s17 = scalar_lea.hbm %s1264_s2, %s539_s3  ;;  %s229_s9 = int_to_ptr.vmem [resolvable:$true] %s228_s9 }
  0x3e   : > { %p567_p0 = pnand %p574_p3, %p1132_p13  ;;  %s226_s27 = sshll.u32 %s225_s17, 4  ;;  %s227_s27 = int_to_ptr.hbm [resolvable:$true] %s226_s27 }
  0x3f   : > { %s1300_s14 = smov 8   ;;  %s1301_s12 = smov 128  }
  0x40   : > { %569 = dma.hbm_to_vmem [thread:$0]  (!%p567_p0), %s227_s27, 512, %s229_s9, %s1047_s10, %s1301_s12, %s1301_s12, %s1300_s14  }
  0x41   : > { %240 = sbr.rel (%p1053_p8) target bundleno = 350 (0x15e), region = 32  ;;  %s242_s28 = sand.u32 (!%p1053_p8), 1, %s910_s19  }
  0x42   : > { %s541_s20 = sshll.u32 (!%p1053_p8), %s242_s28, 3  ;;  %s243_s5 = scalar_lea.sflag (!%p1053_p8), [#allocation3], %s242_s28 }
  0x43   : > { %s246_s15 = scalar_lea.vmem (!%p1053_p8), [#allocation2], %s541_s20 }
  0x46   : > { %865 = dma.done.wait (%p1087_p6), %s243_s5, 128  }
  0x47   : > { %867 = vsyncadd (%p1087_p6), %s243_s5, 4294967168  ;;  %s252_s0 = sand.u32 1, %s1058_s30   ;;  %s254_s23 = sand.u32 1, %s898_s16  }
  0x48   : > { %s542_s12 = sshll.u32 %s254_s23, 5  ;;  %s253_s14 = scalar_lea.sflag [#allocation6], %s252_s0 }
  0x49   : > { %s256_s10 = scalar_lea.vmem [#allocation5], %s542_s12 }
  0x4a   : > { %869 = dma.done.wait (%p1098_p9), %s253_s14, 512  }
  0x4b   : > { %871 = vsyncadd (%p1098_p9), %s253_s14, 4294966784  ;;  %s1181_s29 = sand.u32 1, %s886_s13  }
  0x4c   : > { %s543_s8 = sshll.u32 %s1181_s29, 5 }
  0x4d   : > { %s266_s27 = scalar_lea.vmem [#allocation7], %s543_s8 }
  0x4e   : > { %873 = dma.done.wait (%p1146_p2), %s253_s14, 512  }
  0x4f   : > { %875 = vsyncadd (%p1146_p2), %s253_s14, 4294966784  ;;  %v305_v0 = vld [vmem:[%s256_s10 + $0x18] sm:$0xff]  ;;  %v304_v1 = vld [vmem:[%s256_s10 + $0x10] sm:$0xff]  ;;  %vm306_vm0 = vcmask 261120   ;;  %s547_s11 = sshll.u32 %s922_s22, 1  ;;  %v358_v20 = vlaneseq  ;;  %s544_s18 = sshll.u32 %s1181_s29, 2 }
  0x50   : > { %322 = vmatpush.msra.mxu0 %v305_v0  ;;  %v303_v2 = vld [vmem:[%s256_s10 + $0x8] sm:$0xff]  ;;  %v302_v3 = vld [vmem:[%s256_s10] sm:$0xff]  ;;  %v301_v4 = vld [vmem:[%s246_s15] sm:$0xff]  ;;  %s385_s30 = sadd.s32 %s918_s21, %s547_s11  ;;  %s1302_s9 = sld [smem:[#allocation25_spill]]  ;;  %vm364_vm1 = vcmask 1041409   ;;  %vm366_vm2 = vcmask 1042434  }
  0x51   : > { %v332_v5 = vld [vmem:[%s266_s27 + $0x10] sm:$0xff]  ;;  %v330_v6 = vld [vmem:[%s266_s27] sm:$0xff]  ;;  %v333_v12 = vld [vmem:[%s266_s27 + $0x18] sm:$0xff]  ;;  %s548_s1 = sshll.u32 %s385_s30, 2  ;;  %v359_v21 = vand.u32 127, %v358_v20  ;;  %s299_s21 = scalar_lea.vmem [#allocation8], %s544_s18 }
  0x52   : > { %323 = vmatpush.msra.mxu0 %v304_v1  ;;  %v331_v13 = vld [vmem:[%s266_s27 + $0x8] sm:$0xff]  ;;  %s389_s22 = sshll.u32 %s299_s21, 4  ;;  %vm368_vm3 = vcmask 1043459   ;;  %vm371_vm4 = vcmask 60416   ;;  %s374_s28 = scalar_lea.sflag [#allocation4], %s1181_s29  ;;  %s390_s22 = int_to_ptr.vmem [resolvable:$true] %s389_s22 }
  0x54   : > { %324 = vmatpush.msra.mxu0 %v303_v2 }
  0x56   : > { %325 = vmatpush.msra.mxu0 %v302_v3  ;;  %s387_s3 = scalar_lea.hbm %s1302_s9, %s548_s1  ;;  %s800_s23 = scalar_lea.hbm %s1302_s9, 32 }
  0x57   : > { %545 = vmatmul.msk.f32.vlgmr.msra.gmra.mxu0 %vm306_vm0, %v301_v4  ;;  %s391_s17 = sshll.u32 %s387_s3, 4  ;;  %s392_s17 = int_to_ptr.hbm [resolvable:$true] %s391_s17 }
  0x58   : > { %s794_s20 = sshra.s32 %s392_s17, 4  ;;  %s795_s20 = int_to_ptr.hbm [resolvable:$true] %s794_s20 }
  0x59   : > { %s796_s5 = scalar_lea.hbm %s795_s20, 4  ;;  %p801_p5 = scmp.lt.s32.totalorder %s795_s20, %s1302_s9 }
  0x5a   : > { %p797_p3 = scmp.ne.s32.totalorder %s795_s20, %s796_s5  ;;  %p802_p6 = scmp.lt.s32.totalorder %s800_s23, %s796_s5 }
  0x5c   : > { %p798_p8 = pnand %p797_p3, %p1140_p12  ;;  %p803_p9 = por %p802_p6, %p801_p5 }
  0x5e   : > { %p799_p4 = pneg %p798_p8 }
  0x60   : > { %p804_p11 = pnand %p803_p9, %p799_p4 }
  0xd4   : > { %v327_v7 = vpop.f32.mrf.mxu0 }
  0xd5   : > { %v336_v8 = vmul.f32 %v332_v5, %v327_v7  ;;  %v334_v9 = vmul.f32 %v330_v6, %v327_v7  ;;  %v337_v14 = vmul.f32 %v333_v12, %v327_v7  ;;  %v335_v15 = vmul.f32 %v331_v13, %v327_v7 }
  0xd7   : > { %v344_v10 = vsel %vm306_vm0, %v336_v8, 0.0  ;;  %v338_v11 = vsel %vm306_vm0, %v334_v9, 0.0  ;;  %v347_v16 = vsel %vm306_vm0, %v337_v14, 0.0  ;;  %v341_v17 = vsel %vm306_vm0, %v335_v15, 0.0 }
  0xd8   : > { %345 = vadd.xlane.f32.xlu1 %v344_v10  ;;  %339 = vadd.xlane.f32.xlu0 %v338_v11 }
  0xe0   : > { %348 = vadd.xlane.f32.xlu1 %v347_v16  ;;  %342 = vadd.xlane.f32.xlu0 %v341_v17 }
 0x14b   : > { %v346_v18 = vpop.xlane.xlu1 %345  ;;  %v340_v19 = vpop.xlane.xlu0 %339 }
 0x14c   : > { %v350_v22 = vmul.f32 0.03125, %v340_v19  ;;  %v352_v23 = vmul.f32 0.03125, %v346_v18 }
 0x14e   : > { %v360_v28 = vperm.slane %v350_v22, %v359_v21  ;;  %v362_v30 = vperm.slane %v352_v23, %v359_v21 }
 0x153   : > { %v349_v24 = vpop.xlane.xlu1 %348  ;;  %v343_v25 = vpop.xlane.xlu0 %342 }
 0x154   : > { %v353_v26 = vmul.f32 0.03125, %v349_v24  ;;  %v351_v27 = vmul.f32 0.03125, %v343_v25 }
 0x156   : > { %v361_v29 = vperm.slane %v351_v27, %v359_v21  ;;  %v363_v31 = vperm.slane %v353_v26, %v359_v21 }
 0x158   : > { %v365_v32 = vsel %vm364_vm1, %v361_v29, %v360_v28 }
 0x159   : > { %v367_v33 = vsel %vm366_vm2, %v362_v30, %v365_v32 }
 0x15a   : > { %v369_v34 = vsel %vm368_vm3, %v363_v31, %v367_v33 }
 0x15b   : > { %372 = vst.msk [vmem:[%s299_s21] sm:$0xf] %vm371_vm4, %v369_v34 }
 0x15c   : > { %807 = shalt.err (!%p804_p11)
}
 0x15d   : > { %558 = dma.vmem_to_hbm [thread:$0]  (%p1140_p12), %s390_s22, 64, %s392_s17, %s374_s28  }
 0x15e PF: > { %s1303_s10 = sld [smem:[#allocation13_spill]]  ;;  %p575_p13 = scmp.ge.s32.totalorder %s934_s25, 2 }
 0x160   : > { %p571_p1 = pnand %p575_p13, %p1151_p10 }
 0x162   : > { %p572_p7 = pneg %p571_p1 }
 0x164   : > { %s403_s29 = sand.u32 1, %s1303_s10  }
 0x165   : > { %s404_s8 = scalar_lea.sflag [#allocation4], %s403_s29 }
 0x166   : > { %877 = dma.done.wait (%p572_p7), %s404_s8, 64  }
 0x167   : > { %879 = vsyncadd (%p572_p7), %s404_s8, 4294967232  ;;  %s22_s25 = sadd.s32 1, %s934_s25   ;;  %s1305_s7 = sld [smem:[#allocation14_spill]] }
 0x168   : > { %p1215_p2 = scmp.ge.s32.totalorder %s22_s25, 10   ;;  %s1306_s14 = sld [smem:[#allocation22_spill]] }
 0x169   : > { %s1307_s11 = sld [smem:[#allocation15_spill]]  ;;  %s1314_s12 = smov %s886_s13 }
 0x16a   : > { %s1308_s17 = sld [smem:[#allocation21_spill]]  ;;  %s1316_s15 = smov %s898_s16 }
 0x16b   : > { %s1309_s30 = sld [smem:[#allocation16_spill]]  ;;  %s1318_s18 = smov %s910_s19 }
 0x16c   : > { %s1310_s20 = sld [smem:[#allocation20_spill]]  ;;  %s1320_s22 = smov %s930_s24 }
 0x16d   : > { %s1311_s21 = sld [smem:[#allocation17_spill]]  ;;  %s1315_s13 = smov %s1305_s7 }
 0x16e   : > { %s1312_s23 = sld [smem:[#allocation18_spill]] }
 0x16f   : > { %s1313_s4 = sld [smem:[#allocation19_spill]]  ;;  %s1317_s16 = smov %s1307_s11 }
 0x171   : > { %s1319_s19 = smov %s1309_s30  ;;  %21 = sbr.rel (!%p1215_p2) target bundleno = 16 (0x10), region = 101 }
 0x175   : > { %s1321_s24 = smov %s1313_s4 }
 0x176   :  { %410 = vsyncpa [#allocation3], 1 }
 0x177   :  { %412 = vsyncpa [#allocation3 + $0x1], 1 }
 0x178   :  { %413 = vsyncpa [#allocation6], 1 }
 0x179   :  { %415 = vsyncpa [#allocation6 + $0x1], 1 }
 0x17a   :  { %416 = vsyncpa [#allocation4], 1 }
 0x17b   :  { %418 = vsyncpa [#allocation4 + $0x1], 1 }

</bundles_post_ra>
